<compile_context>
chip_gen: v7x
topology: tpu7x:2x2x1
jax: 0.10.0
libtpu: 0.0.40
codegen_flags: <defaults>
</compile_context>

<pallas_src>
import math
import jax
import jax.numpy as jnp
from jax import lax
from jax.experimental import pallas as pl
from jax.experimental.pallas import tpu as pltpu

# Small, module-consistent sizes.
BATCH = 2
SEQ = 8
EMB = 32
HID = 64
HEADS = 4
HEAD_DIM = EMB // HEADS
TOK = BATCH * SEQ                      # folded batch*seq tokens

# Rows of the packed (8, 128) small-vector slab.
(_ROW_BQKV, _ROW_BPROJ, _ROW_G1, _ROW_BE1,
 _ROW_BFC1, _ROW_BFC2, _ROW_G2, _ROW_BE2) = range(8)
VEC_LANES = 128


def _erf(x):
    # Abramowitz & Stegun 7.1.26 (matches torch.erf to fp32 precision).
    a1, a2, a3, a4, a5 = 0.254829592, -0.284496736, 1.421413741, -1.453152027, 1.061405429
    p = 0.3275911
    ax = jnp.abs(x)
    t = 1.0 / (1.0 + p * ax)
    poly = ((((a5 * t + a4) * t + a3) * t + a2) * t + a1) * t
    y = 1.0 - poly * jnp.exp(-ax * ax)
    return jnp.where(x >= 0.0, y, -y)


def _gelu(x):
    return x * 0.5 * (1.0 + _erf(x * (1.0 / math.sqrt(2.0))))


def _layernorm(x, gamma, beta, eps=1e-12):
    u = jnp.mean(x, axis=-1, keepdims=True)
    d = x - u
    s = jnp.mean(d * d, axis=-1, keepdims=True)
    return gamma * (d * lax.rsqrt(s + eps)) + beta


def block_kernel(x_ref, bias_ref, dup_ref, sel_ref,
                 wqkv_ref, wproj_ref, wfc1_ref, wfc2_ref, vec_ref, o_ref):
    x = x_ref[...]                 # (TOK, E) f32 — all batches folded
    attn_bias = bias_ref[...]      # (HEADS*TOK, TOK) f32: padding + batch-block mask
    sel = sel_ref[...]             # (HEADS*TOK, E) f32: head-selection mask

    # Packed small vectors: row pick + lane range starting at 0.
    b_qkv = vec_ref[_ROW_BQKV:_ROW_BQKV + 1, 0:3 * EMB]   # (1, 3E)
    b_proj = vec_ref[_ROW_BPROJ:_ROW_BPROJ + 1, 0:EMB]
    g1 = vec_ref[_ROW_G1:_ROW_G1 + 1, 0:EMB]
    be1 = vec_ref[_ROW_BE1:_ROW_BE1 + 1, 0:EMB]
    b_fc1 = vec_ref[_ROW_BFC1:_ROW_BFC1 + 1, 0:HID]
    b_fc2 = vec_ref[_ROW_BFC2:_ROW_BFC2 + 1, 0:EMB]
    g2 = vec_ref[_ROW_G2:_ROW_G2 + 1, 0:EMB]
    be2 = vec_ref[_ROW_BE2:_ROW_BE2 + 1, 0:EMB]

    # ---- fused QKV projection: one MXU push (bf16 operands, f32 accumulate) ----
    qkv = jnp.dot(x.astype(jnp.bfloat16), wqkv_ref[...],
                  preferred_element_type=jnp.float32) + b_qkv          # (TOK, 3E)
    q = qkv[:, 0:EMB]
    k = qkv[:, EMB:2 * EMB]
    v = qkv[:, 2 * EMB:3 * EMB]

    # Replicate q rows once per head on the MXU (dup is a precomputed 0/1
    # row-selection matrix), then zero columns outside each row's head.
    q_rep = jnp.dot(dup_ref[...], q.astype(jnp.bfloat16),
                    preferred_element_type=jnp.float32)                # (HEADS*TOK, E)
    q_stacked = q_rep * sel

    # ---- all-head, all-batch scores in one matmul ----
    scores = jnp.einsum('me,ne->mn',
                        q_stacked.astype(jnp.bfloat16), k.astype(jnp.bfloat16),
                        preferred_element_type=jnp.float32)            # (HEADS*TOK, TOK)
    # bias is -1e4 for padded keys and for cross-batch (query batch != key
    # batch) entries; exp of those underflows to exactly 0 in f32.
    scores = scores * (1.0 / math.sqrt(HEAD_DIM)) + attn_bias

    # ---- single stable softmax over all heads / batches ----
    scores = scores - jnp.max(scores, axis=-1, keepdims=True)
    e = jnp.exp(scores)
    probs = e / jnp.sum(e, axis=-1, keepdims=True)      # exact normalization
    # TODO(synk): dropout on attention probabilities omitted (eval-mode identity).

    # ---- context: one matmul for all heads, then fold heads back to (TOK, E) ----
    ctx = jnp.dot(probs.astype(jnp.bfloat16), v.astype(jnp.bfloat16),
                  preferred_element_type=jnp.float32) * sel            # (HEADS*TOK, E)
    attn = ctx[0:TOK]
    for h in range(1, HEADS):                 # static unroll; sublane-aligned adds
        attn = attn + ctx[h * TOK:(h + 1) * TOK]                        # (TOK, E)

    # ---- residual 1: proj + LayerNorm ----
    proj = jnp.dot(attn.astype(jnp.bfloat16), wproj_ref[...],
                   preferred_element_type=jnp.float32) + b_proj
    h1 = _layernorm(x + proj, g1, be1)

    # ---- position-wise feed-forward ----
    f = jnp.dot(h1.astype(jnp.bfloat16), wfc1_ref[...],
                preferred_element_type=jnp.float32) + b_fc1
    f = _gelu(f)
    f = jnp.dot(f.astype(jnp.bfloat16), wfc2_ref[...],
                preferred_element_type=jnp.float32) + b_fc2

    # ---- residual 2 + LayerNorm; single folded store region ----
    o_ref[...] = _layernorm(h1 + f, g2, be2).astype(o_ref.dtype)


def _pack_params(params):
    """Fuse QKV weights (bf16) and pack all small vectors into one (8, 128) slab."""
    (wq, bq, wk, bk, wv, bv, wp, bp, g1, be1, w1, bf1, w2, bf2, g2, be2) = params
    w_qkv = jnp.concatenate([wq, wk, wv], axis=1).astype(jnp.bfloat16)   # (E, 3E)
    b_qkv = jnp.concatenate([bq, bk, bv], axis=1)                        # (1, 3E)

    def row(vec):
        vec = vec.reshape(-1)
        return jnp.pad(vec, (0, VEC_LANES - vec.shape[0]))

    vec = jnp.stack(
        [row(b_qkv), row(bp), row(g1), row(be1),
         row(bf1), row(bf2), row(g2), row(be2)], axis=0).astype(jnp.float32)  # (8, 128)
    return (w_qkv, wp.astype(jnp.bfloat16), w1.astype(jnp.bfloat16),
            w2.astype(jnp.bfloat16), vec)


def _build_constants(mask):
    """Precompute (outside the kernel, since JAX does not CSE iota/broadcast):
       - dup:  (HEADS*TOK, TOK) 0/1 row-duplication matrix (bf16, MXU operand)
       - sel:  (HEADS*TOK, E)   head-selection mask
       - bias: (HEADS*TOK, TOK) additive mask = -1e4 where the key is padded OR
               the key's batch differs from the query row's batch."""
    B, S = mask.shape
    T = B * S
    rows = jnp.arange(HEADS * T)
    row_head = rows // T                      # head this stacked row belongs to
    row_tok = rows % T                        # folded token it replicates
    sel = (row_head[:, None] == (jnp.arange(EMB)[None, :] // HEAD_DIM)).astype(jnp.float32)
    dup = (row_tok[:, None] == jnp.arange(T)[None, :]).astype(jnp.bfloat16)
    q_batch = row_tok // S
    k_batch = jnp.arange(T) // S
    key_valid = mask.reshape(T) > 0.5
    valid = (q_batch[:, None] == k_batch[None, :]) & key_valid[None, :]
    attn_bias = -10000.0 * (1.0 - valid.astype(jnp.float32))
    return attn_bias, dup, sel


def run_block(x, mask, params):
    B, S, E = x.shape
    T = B * S
    w_qkv, w_proj, w_fc1, w_fc2, vec = _pack_params(params)
    attn_bias, dup, sel = _build_constants(mask)
    x2 = x.reshape(T, E).astype(jnp.float32)

    def full_spec(arr):
        n = arr.ndim
        return pl.BlockSpec(arr.shape, lambda *_, _n=n: (0,) * _n)

    operands = (x2, attn_bias, dup, sel, w_qkv, w_proj, w_fc1, w_fc2, vec)

    # Gridless call: the whole (tiny) problem runs in one invocation — no
    # per-grid-step overhead, single set of MXU push latencies.
    # TODO(synk): on v7x (2 TC/chip) a grid=(B,) "parallel" variant could be
    # benchmarked against this folded one; folded wins on single-TC v5e/v6e.
    out = pl.pallas_call(
        block_kernel,
        out_shape=jax.ShapeDtypeStruct((T, E), jnp.float32),
        in_specs=[full_spec(a) for a in operands],
        out_specs=pl.BlockSpec((T, E), lambda *_: (0, 0)),
        cost_estimate=pl.CostEstimate(flops=460_000, transcendentals=2_100,
                                      bytes_accessed=45_000),
    )(*operands)
    return out.reshape(B, S, E)


def init_params(key):
    """Deterministic nn.Linear-style init. Weights stored as [in, out]."""
    ks = list(jax.random.split(key, 16))

    def linear(k, fan_in, fan_out):
        kw, kb = jax.random.split(k)
        bound = 1.0 / math.sqrt(fan_in)
        w = jax.random.uniform(kw, (fan_in, fan_out), jnp.float32, -bound, bound)
        b = jax.random.uniform(kb, (1, fan_out), jnp.float32, -bound, bound)
        return w, b

    wq, bq = linear(ks[0], EMB, EMB)
    wk, bk = linear(ks[1], EMB, EMB)
    wv, bv = linear(ks[2], EMB, EMB)
    wp, bp = linear(ks[3], EMB, EMB)
    g1 = jnp.ones((1, EMB), jnp.float32)
    be1 = jnp.zeros((1, EMB), jnp.float32)
    w1, bf1 = linear(ks[4], EMB, HID)
    w2, bf2 = linear(ks[5], HID, EMB)
    g2 = jnp.ones((1, EMB), jnp.float32)
    be2 = jnp.zeros((1, EMB), jnp.float32)
    return (wq, bq, wk, bk, wv, bv, wp, bp, g1, be1, w1, bf1, w2, bf2, g2, be2)


def block_reference(x, mask, params, matmul_dtype=jnp.float32):
    """Pure-JAX mirror of the PyTorch forward (eval mode).
    matmul_dtype=jnp.bfloat16 reproduces the kernel's bf16 MXU operands
    (with f32 accumulation) for a tight regression check."""
    (wq, bq, wk, bk, wv, bv, wp, bp, g1, be1, w1, bf1, w2, bf2, g2, be2) = params
    B, S, E = x.shape

    def mm(a, b):
        return jnp.dot(a.astype(matmul_dtype), b.astype(matmul_dtype),
                       preferred_element_type=jnp.float32)

    def ln(t, g, b):
        u = t.mean(-1, keepdims=True)
        s = ((t - u) ** 2).mean(-1, keepdims=True)
        return g * ((t - u) / jnp.sqrt(s + 1e-12)) + b

    q, k, v = mm(x, wq) + bq, mm(x, wk) + bk, mm(x, wv) + bv

    def split(t):
        return t.reshape(B, S, HEADS, HEAD_DIM).transpose(0, 2, 1, 3)

    qh, kh, vh = split(q), split(k), split(v)
    sc = jnp.einsum('bhqd,bhkd->bhqk', qh.astype(matmul_dtype), kh.astype(matmul_dtype),
                    preferred_element_type=jnp.float32) / math.sqrt(HEAD_DIM)
    sc = sc - 10000.0 * (1.0 - mask[:, None, None, :])
    p = jax.nn.softmax(sc, axis=-1)
    h = jnp.einsum('bhqk,bhkd->bhqd', p.astype(matmul_dtype), vh.astype(matmul_dtype),
                   preferred_element_type=jnp.float32)
    h = h.transpose(0, 2, 1, 3).reshape(B, S, E)
    h1 = ln(x + (mm(h, wp) + bp), g1, be1)
    f = mm(h1, w1) + bf1
    f = f * 0.5 * (1.0 + _erf(f / math.sqrt(2.0)))
    f = mm(f, w2) + bf2
    return ln(h1 + f, g2, be2)


if __name__ == "__main__":
    key = jax.random.PRNGKey(0)
    kx, kp = jax.random.split(key)
    x = jax.random.normal(kx, (BATCH, SEQ, EMB), jnp.float32)
    # mask: 1.0 for valid tokens, 0.0 for padding (lengths 8 and 5)
    lengths = jnp.array([SEQ, 5])
    mask = (jnp.arange(SEQ)[None, :] < lengths[:, None]).astype(jnp.float32)

    params = init_params(kp)

    out = run_block(x, mask, params)
    out = jax.block_until_ready(out)
    assert out.shape == (BATCH, SEQ, EMB)

    # Tight check against a reference that matches the kernel's bf16 MXU
    # operands — catches layout / masking / batch-folding regressions.
    ref_bf16 = block_reference(x, mask, params, matmul_dtype=jnp.bfloat16)
    assert bool(jnp.allclose(out, ref_bf16, atol=5e-3, rtol=5e-3)), \
        f"bf16-matched max abs diff {float(jnp.max(jnp.abs(out - ref_bf16)))}"

    # Looser check against the full-f32 PyTorch-equivalent reference; the gap
    # is the documented cost of bf16 MXU operands (f32 accumulation).
    ref_f32 = block_reference(x, mask, params)
    assert bool(jnp.allclose(out, ref_f32, atol=5e-2, rtol=5e-2)), \
        f"f32 max abs diff {float(jnp.max(jnp.abs(out - ref_f32)))}"

    print("KERNEL_OK")
</pallas_src>

<mosaic_0001>
module attributes {stable_mosaic.version = 11 : i64} {
  func.func @block_kernel(%arg0: memref<16x32xf32, #tpu.memory_space<vmem>>, %arg1: memref<64x16xf32, #tpu.memory_space<vmem>>, %arg2: memref<64x16xbf16, #tpu.memory_space<vmem>>, %arg3: memref<64x32xf32, #tpu.memory_space<vmem>>, %arg4: memref<32x96xbf16, #tpu.memory_space<vmem>>, %arg5: memref<32x32xbf16, #tpu.memory_space<vmem>>, %arg6: memref<32x64xbf16, #tpu.memory_space<vmem>>, %arg7: memref<64x32xbf16, #tpu.memory_space<vmem>>, %arg8: memref<8x128xf32, #tpu.memory_space<vmem>>, %arg9: memref<16x32xf32, #tpu.memory_space<vmem>>) attributes {dimension_semantics = [], scalar_prefetch = 0 : i64, scratch_operands = 0 : i64, tpu.core_type = #tpu.core_type<tc>} {
    %c0 = arith.constant 0 : index
    %c0_0 = arith.constant 0 : index
    %0 = vector.load %arg0[%c0, %c0_0] : memref<16x32xf32, #tpu.memory_space<vmem>>, vector<16x32xf32>
    %c0_1 = arith.constant 0 : index
    %c0_2 = arith.constant 0 : index
    %1 = vector.load %arg1[%c0_1, %c0_2] : memref<64x16xf32, #tpu.memory_space<vmem>>, vector<64x16xf32>
    %c0_3 = arith.constant 0 : index
    %c0_4 = arith.constant 0 : index
    %2 = vector.load %arg3[%c0_3, %c0_4] : memref<64x32xf32, #tpu.memory_space<vmem>>, vector<64x32xf32>
    %c0_5 = arith.constant 0 : index
    %c0_6 = arith.constant 0 : index
    %3 = vector.load %arg8[%c0_5, %c0_6] : memref<8x128xf32, #tpu.memory_space<vmem>>, vector<1x96xf32>
    %c1 = arith.constant 1 : index
    %c0_7 = arith.constant 0 : index
    %4 = vector.load %arg8[%c1, %c0_7] : memref<8x128xf32, #tpu.memory_space<vmem>>, vector<1x32xf32>
    %c2 = arith.constant 2 : index
    %c0_8 = arith.constant 0 : index
    %5 = vector.load %arg8[%c2, %c0_8] : memref<8x128xf32, #tpu.memory_space<vmem>>, vector<1x32xf32>
    %c3 = arith.constant 3 : index
    %c0_9 = arith.constant 0 : index
    %6 = vector.load %arg8[%c3, %c0_9] : memref<8x128xf32, #tpu.memory_space<vmem>>, vector<1x32xf32>
    %c4 = arith.constant 4 : index
    %c0_10 = arith.constant 0 : index
    %7 = vector.load %arg8[%c4, %c0_10] : memref<8x128xf32, #tpu.memory_space<vmem>>, vector<1x64xf32>
    %c5 = arith.constant 5 : index
    %c0_11 = arith.constant 0 : index
    %8 = vector.load %arg8[%c5, %c0_11] : memref<8x128xf32, #tpu.memory_space<vmem>>, vector<1x32xf32>
    %c6 = arith.constant 6 : index
    %c0_12 = arith.constant 0 : index
    %9 = vector.load %arg8[%c6, %c0_12] : memref<8x128xf32, #tpu.memory_space<vmem>>, vector<1x32xf32>
    %c7 = arith.constant 7 : index
    %c0_13 = arith.constant 0 : index
    %10 = vector.load %arg8[%c7, %c0_13] : memref<8x128xf32, #tpu.memory_space<vmem>>, vector<1x32xf32>
    %11 = arith.truncf %0 : vector<16x32xf32> to vector<16x32xbf16>
    %c0_14 = arith.constant 0 : index
    %c0_15 = arith.constant 0 : index
    %12 = vector.load %arg4[%c0_14, %c0_15] : memref<32x96xbf16, #tpu.memory_space<vmem>>, vector<32x96xbf16>
    %cst = arith.constant dense<0.000000e+00> : vector<16x96xf32>
    %13 = tpu.matmul %11, %12, %cst {dimension_numbers = #tpu.dot_dimension_numbers<[1], [0], [0], [1], [0, 0, 1, 1], [], []>} : vector<16x32xbf16>, vector<32x96xbf16>, vector<16x96xf32> -> vector<16x96xf32>
    %14 = vector.broadcast %3 : vector<1x96xf32> to vector<16x96xf32>
    %15 = arith.addf %13, %14 : vector<16x96xf32>
    %16 = vector.extract_strided_slice %15 {offsets = [0, 0], sizes = [16, 32], strides = [1, 1]} : vector<16x96xf32> to vector<16x32xf32>
    %17 = vector.extract_strided_slice %15 {offsets = [0, 32], sizes = [16, 32], strides = [1, 1]} : vector<16x96xf32> to vector<16x32xf32>
    %18 = vector.extract_strided_slice %15 {offsets = [0, 64], sizes = [16, 32], strides = [1, 1]} : vector<16x96xf32> to vector<16x32xf32>
    %c0_16 = arith.constant 0 : index
    %c0_17 = arith.constant 0 : index
    %19 = vector.load %arg2[%c0_16, %c0_17] : memref<64x16xbf16, #tpu.memory_space<vmem>>, vector<64x16xbf16>
    %20 = arith.truncf %16 : vector<16x32xf32> to vector<16x32xbf16>
    %cst_18 = arith.constant dense<0.000000e+00> : vector<64x32xf32>
    %21 = tpu.matmul %19, %20, %cst_18 {dimension_numbers = #tpu.dot_dimension_numbers<[1], [0], [0], [1], [0, 0, 1, 1], [], []>} : vector<64x16xbf16>, vector<16x32xbf16>, vector<64x32xf32> -> vector<64x32xf32>
    %22 = arith.mulf %21, %2 : vector<64x32xf32>
    %23 = arith.truncf %22 : vector<64x32xf32> to vector<64x32xbf16>
    %24 = arith.truncf %17 : vector<16x32xf32> to vector<16x32xbf16>
    "tpu.trace_start"() <{level = 10 : i32, message = "me,ne->mn"}> : () -> ()
    %cst_19 = arith.constant dense<0.000000e+00> : vector<64x16xf32>
    %25 = tpu.matmul %23, %24, %cst_19 {dimension_numbers = #tpu.dot_dimension_numbers<[1], [1], [0], [0], [0, 0, 1, 0], [], []>} : vector<64x32xbf16>, vector<16x32xbf16>, vector<64x16xf32> -> vector<64x16xf32>
    "tpu.trace_stop"() : () -> ()
    %cst_20 = arith.constant 0.353553385 : f32
    %26 = vector.broadcast %cst_20 : f32 to vector<64x16xf32>
    %27 = arith.mulf %25, %26 : vector<64x16xf32>
    %28 = arith.addf %27, %1 : vector<64x16xf32>
    %cst_21 = arith.constant dense<0xFF800000> : vector<64xf32>
    %29 = vector.multi_reduction <maximumf>, %28, %cst_21 [1] : vector<64x16xf32> to vector<64xf32>
    %30 = vector.shape_cast %29 : vector<64xf32> to vector<64x1xf32>
    %31 = vector.broadcast %30 : vector<64x1xf32> to vector<64x16xf32>
    %32 = arith.subf %28, %31 : vector<64x16xf32>
    %33 = math.exp %32 : vector<64x16xf32>
    %cst_22 = arith.constant dense<0.000000e+00> : vector<64xf32>
    %34 = vector.multi_reduction <add>, %33, %cst_22 [1] : vector<64x16xf32> to vector<64xf32>
    %35 = vector.shape_cast %34 : vector<64xf32> to vector<64x1xf32>
    %36 = vector.broadcast %35 : vector<64x1xf32> to vector<64x16xf32>
    %37 = arith.divf %33, %36 : vector<64x16xf32>
    %38 = arith.truncf %37 : vector<64x16xf32> to vector<64x16xbf16>
    %39 = arith.truncf %18 : vector<16x32xf32> to vector<16x32xbf16>
    %cst_23 = arith.constant dense<0.000000e+00> : vector<64x32xf32>
    %40 = tpu.matmul %38, %39, %cst_23 {dimension_numbers = #tpu.dot_dimension_numbers<[1], [0], [0], [1], [0, 0, 1, 1], [], []>} : vector<64x16xbf16>, vector<16x32xbf16>, vector<64x32xf32> -> vector<64x32xf32>
    %41 = arith.mulf %40, %2 : vector<64x32xf32>
    %42 = vector.extract_strided_slice %41 {offsets = [0, 0], sizes = [16, 32], strides = [1, 1]} : vector<64x32xf32> to vector<16x32xf32>
    %43 = vector.extract_strided_slice %41 {offsets = [16, 0], sizes = [16, 32], strides = [1, 1]} : vector<64x32xf32> to vector<16x32xf32>
    %44 = arith.addf %42, %43 : vector<16x32xf32>
    %45 = vector.extract_strided_slice %41 {offsets = [32, 0], sizes = [16, 32], strides = [1, 1]} : vector<64x32xf32> to vector<16x32xf32>
    %46 = arith.addf %44, %45 : vector<16x32xf32>
    %47 = vector.extract_strided_slice %41 {offsets = [48, 0], sizes = [16, 32], strides = [1, 1]} : vector<64x32xf32> to vector<16x32xf32>
    %48 = arith.addf %46, %47 : vector<16x32xf32>
    %49 = arith.truncf %48 : vector<16x32xf32> to vector<16x32xbf16>
    %c0_24 = arith.constant 0 : index
    %c0_25 = arith.constant 0 : index
    %50 = vector.load %arg5[%c0_24, %c0_25] : memref<32x32xbf16, #tpu.memory_space<vmem>>, vector<32x32xbf16>
    %cst_26 = arith.constant dense<0.000000e+00> : vector<16x32xf32>
    %51 = tpu.matmul %49, %50, %cst_26 {dimension_numbers = #tpu.dot_dimension_numbers<[1], [0], [0], [1], [0, 0, 1, 1], [], []>} : vector<16x32xbf16>, vector<32x32xbf16>, vector<16x32xf32> -> vector<16x32xf32>
    %52 = vector.broadcast %4 : vector<1x32xf32> to vector<16x32xf32>
    %53 = arith.addf %51, %52 : vector<16x32xf32>
    %54 = arith.addf %0, %53 : vector<16x32xf32>
    %cst_27 = arith.constant dense<0.000000e+00> : vector<16xf32>
    %55 = vector.multi_reduction <add>, %54, %cst_27 [1] : vector<16x32xf32> to vector<16xf32>
    %56 = vector.shape_cast %55 : vector<16xf32> to vector<16x1xf32>
    %cst_28 = arith.constant 3.200000e+01 : f32
    %57 = vector.broadcast %cst_28 : f32 to vector<16x1xf32>
    %58 = arith.divf %56, %57 : vector<16x1xf32>
    %59 = vector.broadcast %58 : vector<16x1xf32> to vector<16x32xf32>
    %60 = arith.subf %54, %59 : vector<16x32xf32>
    %61 = arith.mulf %60, %60 : vector<16x32xf32>
    %cst_29 = arith.constant dense<0.000000e+00> : vector<16xf32>
    %62 = vector.multi_reduction <add>, %61, %cst_29 [1] : vector<16x32xf32> to vector<16xf32>
    %63 = vector.shape_cast %62 : vector<16xf32> to vector<16x1xf32>
    %cst_30 = arith.constant 3.200000e+01 : f32
    %64 = vector.broadcast %cst_30 : f32 to vector<16x1xf32>
    %65 = arith.divf %63, %64 : vector<16x1xf32>
    %cst_31 = arith.constant 9.99999996E-13 : f32
    %66 = vector.broadcast %cst_31 : f32 to vector<16x1xf32>
    %67 = arith.addf %65, %66 : vector<16x1xf32>
    %68 = math.rsqrt %67 : vector<16x1xf32>
    %69 = vector.broadcast %68 : vector<16x1xf32> to vector<16x32xf32>
    %70 = arith.mulf %60, %69 : vector<16x32xf32>
    %71 = vector.broadcast %5 : vector<1x32xf32> to vector<16x32xf32>
    %72 = arith.mulf %71, %70 : vector<16x32xf32>
    %73 = vector.broadcast %6 : vector<1x32xf32> to vector<16x32xf32>
    %74 = arith.addf %72, %73 : vector<16x32xf32>
    %75 = arith.truncf %74 : vector<16x32xf32> to vector<16x32xbf16>
    %c0_32 = arith.constant 0 : index
    %c0_33 = arith.constant 0 : index
    %76 = vector.load %arg6[%c0_32, %c0_33] : memref<32x64xbf16, #tpu.memory_space<vmem>>, vector<32x64xbf16>
    %cst_34 = arith.constant dense<0.000000e+00> : vector<16x64xf32>
    %77 = tpu.matmul %75, %76, %cst_34 {dimension_numbers = #tpu.dot_dimension_numbers<[1], [0], [0], [1], [0, 0, 1, 1], [], []>} : vector<16x32xbf16>, vector<32x64xbf16>, vector<16x64xf32> -> vector<16x64xf32>
    %78 = vector.broadcast %7 : vector<1x64xf32> to vector<16x64xf32>
    %79 = arith.addf %77, %78 : vector<16x64xf32>
    %cst_35 = arith.constant 5.000000e-01 : f32
    %80 = vector.broadcast %cst_35 : f32 to vector<16x64xf32>
    %81 = arith.mulf %79, %80 : vector<16x64xf32>
    %cst_36 = arith.constant 0.707106769 : f32
    %82 = vector.broadcast %cst_36 : f32 to vector<16x64xf32>
    %83 = arith.mulf %79, %82 : vector<16x64xf32>
    %84 = math.absf %83 : vector<16x64xf32>
    %cst_37 = arith.constant 0.327591091 : f32
    %85 = vector.broadcast %cst_37 : f32 to vector<16x64xf32>
    %86 = arith.mulf %85, %84 : vector<16x64xf32>
    %cst_38 = arith.constant 1.000000e+00 : f32
    %87 = vector.broadcast %cst_38 : f32 to vector<16x64xf32>
    %88 = arith.addf %87, %86 : vector<16x64xf32>
    %cst_39 = arith.constant 1.000000e+00 : f32
    %89 = vector.broadcast %cst_39 : f32 to vector<16x64xf32>
    %90 = arith.divf %89, %88 : vector<16x64xf32>
    %cst_40 = arith.constant 1.06140542 : f32
    %91 = vector.broadcast %cst_40 : f32 to vector<16x64xf32>
    %92 = arith.mulf %91, %90 : vector<16x64xf32>
    %cst_41 = arith.constant -1.45315206 : f32
    %93 = vector.broadcast %cst_41 : f32 to vector<16x64xf32>
    %94 = arith.addf %92, %93 : vector<16x64xf32>
    %95 = arith.mulf %94, %90 : vector<16x64xf32>
    %cst_42 = arith.constant 1.42141378 : f32
    %96 = vector.broadcast %cst_42 : f32 to vector<16x64xf32>
    %97 = arith.addf %95, %96 : vector<16x64xf32>
    %98 = arith.mulf %97, %90 : vector<16x64xf32>
    %cst_43 = arith.constant -0.284496725 : f32
    %99 = vector.broadcast %cst_43 : f32 to vector<16x64xf32>
    %100 = arith.addf %98, %99 : vector<16x64xf32>
    %101 = arith.mulf %100, %90 : vector<16x64xf32>
    %cst_44 = arith.constant 0.254829586 : f32
    %102 = vector.broadcast %cst_44 : f32 to vector<16x64xf32>
    %103 = arith.addf %101, %102 : vector<16x64xf32>
    %104 = arith.mulf %103, %90 : vector<16x64xf32>
    %cst_45 = arith.constant 0.000000e+00 : f32
    %105 = vector.broadcast %cst_45 : f32 to vector<16x64xf32>
    %106 = arith.subf %105, %84 : vector<16x64xf32>
    %107 = arith.mulf %106, %84 : vector<16x64xf32>
    %108 = math.exp %107 : vector<16x64xf32>
    %109 = arith.mulf %104, %108 : vector<16x64xf32>
    %cst_46 = arith.constant 1.000000e+00 : f32
    %110 = vector.broadcast %cst_46 : f32 to vector<16x64xf32>
    %111 = arith.subf %110, %109 : vector<16x64xf32>
    %cst_47 = arith.constant 0.000000e+00 : f32
    %112 = vector.broadcast %cst_47 : f32 to vector<16x64xf32>
    %113 = arith.cmpf oge, %83, %112 : vector<16x64xf32>
    %cst_48 = arith.constant 0.000000e+00 : f32
    %114 = vector.broadcast %cst_48 : f32 to vector<16x64xf32>
    %115 = arith.subf %114, %111 : vector<16x64xf32>
    %116 = arith.select %113, %111, %115 : vector<16x64xi1>, vector<16x64xf32>
    %cst_49 = arith.constant 1.000000e+00 : f32
    %117 = vector.broadcast %cst_49 : f32 to vector<16x64xf32>
    %118 = arith.addf %117, %116 : vector<16x64xf32>
    %119 = arith.mulf %81, %118 : vector<16x64xf32>
    %120 = arith.truncf %119 : vector<16x64xf32> to vector<16x64xbf16>
    %c0_50 = arith.constant 0 : index
    %c0_51 = arith.constant 0 : index
    %121 = vector.load %arg7[%c0_50, %c0_51] : memref<64x32xbf16, #tpu.memory_space<vmem>>, vector<64x32xbf16>
    %cst_52 = arith.constant dense<0.000000e+00> : vector<16x32xf32>
    %122 = tpu.matmul %120, %121, %cst_52 {dimension_numbers = #tpu.dot_dimension_numbers<[1], [0], [0], [1], [0, 0, 1, 1], [], []>} : vector<16x64xbf16>, vector<64x32xbf16>, vector<16x32xf32> -> vector<16x32xf32>
    %123 = vector.broadcast %8 : vector<1x32xf32> to vector<16x32xf32>
    %124 = arith.addf %122, %123 : vector<16x32xf32>
    %125 = arith.addf %74, %124 : vector<16x32xf32>
    %cst_53 = arith.constant dense<0.000000e+00> : vector<16xf32>
    %126 = vector.multi_reduction <add>, %125, %cst_53 [1] : vector<16x32xf32> to vector<16xf32>
    %127 = vector.shape_cast %126 : vector<16xf32> to vector<16x1xf32>
    %cst_54 = arith.constant 3.200000e+01 : f32
    %128 = vector.broadcast %cst_54 : f32 to vector<16x1xf32>
    %129 = arith.divf %127, %128 : vector<16x1xf32>
    %130 = vector.broadcast %129 : vector<16x1xf32> to vector<16x32xf32>
    %131 = arith.subf %125, %130 : vector<16x32xf32>
    %132 = arith.mulf %131, %131 : vector<16x32xf32>
    %cst_55 = arith.constant dense<0.000000e+00> : vector<16xf32>
    %133 = vector.multi_reduction <add>, %132, %cst_55 [1] : vector<16x32xf32> to vector<16xf32>
    %134 = vector.shape_cast %133 : vector<16xf32> to vector<16x1xf32>
    %cst_56 = arith.constant 3.200000e+01 : f32
    %135 = vector.broadcast %cst_56 : f32 to vector<16x1xf32>
    %136 = arith.divf %134, %135 : vector<16x1xf32>
    %cst_57 = arith.constant 9.99999996E-13 : f32
    %137 = vector.broadcast %cst_57 : f32 to vector<16x1xf32>
    %138 = arith.addf %136, %137 : vector<16x1xf32>
    %139 = math.rsqrt %138 : vector<16x1xf32>
    %140 = vector.broadcast %139 : vector<16x1xf32> to vector<16x32xf32>
    %141 = arith.mulf %131, %140 : vector<16x32xf32>
    %142 = vector.broadcast %9 : vector<1x32xf32> to vector<16x32xf32>
    %143 = arith.mulf %142, %141 : vector<16x32xf32>
    %144 = vector.broadcast %10 : vector<1x32xf32> to vector<16x32xf32>
    %145 = arith.addf %143, %144 : vector<16x32xf32>
    %c0_58 = arith.constant 0 : index
    %c0_59 = arith.constant 0 : index
    %146 = vector.load %arg9[%c0_58, %c0_59] : memref<16x32xf32, #tpu.memory_space<vmem>>, vector<16x32xf32>
    tpu.vector_store %arg9[%c0_58, %c0_59], %145 {strides = array<i32>} : memref<16x32xf32, #tpu.memory_space<vmem>>, vector<16x32xf32>,
    return
  }
}

</mosaic_0001>

<bundles_post_ra>
// kernel: tpu_custom_call.1
= control target key start
LH: loop header
LB: loop body
LE: loop exit
PB: predicated region body
PF: predicated region fallthrough
CT: control target
= control target key end

     0   :  { %v1125_v1 = vmov 0.0   ;;  %vm1126_vm0 = vmmov 0   ;;  %vm81_vm1 = vcmask 261120   ;;  %s1434_s0 = inlined_call_operand.vmem [shape: f32[16,32], index: 0, kind: input, shape index: {}]   ;;  %s1435_s1 = inlined_call_operand.vmem [shape: f32[64,16], index: 1, kind: input, shape index: {}]   ;;  %s1436_s2 = inlined_call_operand.vmem [shape: bf16[64,16], index: 2, kind: input, shape index: {}]   ;;  %s1437_s3 = inlined_call_operand.vmem [shape: f32[64,32], index: 3, kind: input, shape index: {}]   ;;  %s1438_s4 = inlined_call_operand.vmem [shape: bf16[32,96], index: 4, kind: input, shape index: {}]   ;;  %s1439_s5 = inlined_call_operand.vmem [shape: bf16[32,32], index: 5, kind: input, shape index: {}]   ;;  %s1440_s6 = inlined_call_operand.vmem [shape: bf16[32,64], index: 6, kind: input, shape index: {}]   ;;  %s1441_s7 = inlined_call_operand.vmem [shape: bf16[64,32], index: 7, kind: input, shape index: {}]   ;;  %s1442_s8 = inlined_call_operand.vmem [shape: f32[8,128], index: 8, kind: input, shape index: {}]   ;;  %s1443_s9 = inlined_call_operand.hbm [shape: f32[16,32], index: 9, kind: output, shape index: {}]  }
   0x1   :  { %v1039_v0 = vld [vmem:[%s1438_s4] sm:$0xff]   ;;  %962 = vmatprep.subr.bf16.mxu0 %v1125_v1  ;;  %v1040_v2 = vld [vmem:[%s1438_s4 + $0x8] sm:$0xff]   ;;  %966 = vmatprep.mubr.msk.bf16.mxu0 %vm1126_vm0, %v1125_v1 }
   0x2   :  { %963 = vmatpush3.bf16.msra.mxu0 %v1039_v0  ;;  %v1194_v3 = vld [vmem:[%s1434_s0] sm:$0xff]  ;;  %v1199_v4 = vld [vmem:[%s1434_s0 + $0x8] sm:$0xff] }
   0x3   :  { %964 = vmatprep.subr.bf16.mxu0 %v1125_v1  ;;  %v60_v5 = vpack.c.bf16 %v1199_v4, %v1194_v3 }
   0x6   :  { %965 = vmatpush3.bf16.msra.mxu0 %v1040_v2 }
   0x9   :  { %967 = vmatmul.mubr.msk.bf16.vlgmr.msra.gmra.mrb[0].mxu0 %vm81_vm1, %v60_v5 }
   0xa   :  { %14 = vsyncpa [#allocation3], 0  ;;  %v1041_v6 = vld [vmem:[%s1436_s2] sm:$0xff]   ;;  %vm155_vm2 = vcmask 130048   ;;  %s1127_s19 = smov 96   ;;  %v1042_v15 = vld [vmem:[%s1436_s2 + $0x8] sm:$0xff]  }
   0xb   :  { %972 = vmatprep.mubr.msk.bf16.mxu1 %vm155_vm2, %v1041_v6  ;;  %v895_v7 = vld [vmem:[%s1442_s8] ss:$0 sm:$0xff]  ;;  %v1043_v16 = vld [vmem:[%s1436_s2 + $0x10] sm:$0xff]   ;;  %v1044_v17 = vld [vmem:[%s1436_s2 + $0x18] sm:$0xff]   ;;  %vm792_vm5 = vcmask 523264   ;;  %s1129_s12 = smov [#allocation2]  }
   0xc   :  { %v1236_v20 = vld [vmem:[%s1437_s3 + $0x10] sm:$0xff]  ;;  %v1241_v22 = vld [vmem:[%s1437_s3 + $0x18] sm:$0xff]  ;;  %v1246_v23 = vld [vmem:[%s1437_s3] sm:$0xff]  ;;  %s884_s13 = sshll.u32 %s1129_s12, 4  ;;  %s885_s13 = int_to_ptr.vmem [resolvable:$true] %s884_s13 }
   0xd   :  { %v1251_v25 = vld [vmem:[%s1437_s3 + $0x8] sm:$0xff]  ;;  %v1260_v34 = vld [vmem:[%s1437_s3 + $0x30] sm:$0xff]  ;;  %v1265_v35 = vld [vmem:[%s1437_s3 + $0x20] sm:$0xff]  ;;  %s1101_s14 = scalar_lea.vmem %s885_s13, 256  ;;  %p1106_p1 = scmp.lt.s32.totalorder %s885_s13, %s885_s13 }
   0xe   :  { %v1271_v37 = vld [vmem:[%s1437_s3 + $0x38] sm:$0xff]  ;;  %v1278_v40 = vld [vmem:[%s1437_s3 + $0x28] sm:$0xff]  ;;  %v38_v49 = vld [vmem:[%s1435_s1 + $0x10] sm:$0xff]  ;;  %p1102_p0 = scmp.ne.s32.totalorder %s885_s13, %s1101_s14  ;;  %p1107_p2 = scmp.lt.s32.totalorder %s1101_s14, %s1101_s14 }
   0xf   :  { %v36_v52 = vld [vmem:[%s1435_s1] sm:$0xff]  ;;  %v39_v55 = vld [vmem:[%s1435_s1 + $0x18] sm:$0xff]  ;;  %v37_v0 = vld [vmem:[%s1435_s1 + $0x8] sm:$0xff] }
  0x10   :  { %p1108_p3 = por %p1107_p2, %p1106_p1 }
  0x12   :  { %p1109_p4 = pnand %p1108_p3, %p1102_p0 }
  0xdc   :  { %v119_v8 = vpop.f32.mrb[0].mxu0 }
  0xdd   :  { %v968_v9 = vpop.f32.mrb[1].mxu0  ;;  %v120_v11 = vadd.f32 %v895_v7, %v119_v8 }
  0xde   :  { %v122_v10 = vpop.f32.mrb[2].mxu0 }
  0xdf   :  { %v123_v12 = vadd.f32 %v895_v7, %v122_v10  ;;  %v969_v13 = vpop.f32.mrb[3].mxu0  ;;  %v42_v10 = vld [vmem:[%s1435_s1 + $0x30] sm:$0xff] }
  0xe1   :  { %v1212_v14 = vpack.c.bf16 %v123_v12, %v120_v11 }
  0xe3   :  { %246 = vrot.lane.b32.xlu0 %v1212_v14, %s1127_s19  ;;  %970 = vmatprep.subr.bf16.mxu1 %v1212_v14 }
  0xe4   :  { %971 = vmatpush3.bf16.msra.mxu1 %v1212_v14 }
  0xe7   :  { %973 = vmatmul.mubr.msk.bf16.vlgmr.msra.gmra.mrb[0].mxu1 %vm155_vm2, %v1042_v15 }
  0xe8   :  { %976 = vmatprep.mubr.msk.bf16.mxu1 %vm155_vm2, %v1043_v16  ;;  %v40_v16 = vld [vmem:[%s1435_s1 + $0x20] sm:$0xff] }
  0xef   :  { %977 = vmatmul.mubr.msk.bf16.gmra.mrb[4].mxu1 %vm155_vm2, %v1044_v17 }
 0x155   :  { %v247_v18 = vpop.permute.xlu0 %246 }
 0x156   :  { %1030 = vmatprep.subr.msk.bf16.mxu0 %vm81_vm1, %v247_v18  ;;  %1031 = vmatprep.subr.msk.bf16.mxu1 %vm81_vm1, %v247_v18  ;;  %v261_v19 = vsel %vm81_vm1, %v247_v18, 0 }
 0x157   :  { %981 = vmatpush3.bf16.xpose.msra.mxu0 %v261_v19  ;;  %1029 = vmatpush3.bf16.xpose.msra.mxu1 %v261_v19 }
 0x158   :  { %1000 = vmatprep.subr.bf16.mxu0 %v1125_v1 }
 0x1ba   :  { %v974_v21 = vpop.f32.mrb[0].mxu1 }
 0x1bb   :  { %v202_v24 = vpop.f32.mrb[1].mxu1  ;;  %v235_v27 = vmul.f32 %v974_v21, %v1236_v20  ;;  %v41_v21 = vld [vmem:[%s1435_s1 + $0x28] sm:$0xff] }
 0x1bc   :  { %v975_v26 = vpop.f32.mrb[2].mxu1  ;;  %v233_v30 = vmul.f32 %v202_v24, %v1246_v23 }
 0x1bd   :  { %v236_v28 = vmul.f32 %v975_v26, %v1241_v22  ;;  %v205_v29 = vpop.f32.mrb[3].mxu1 }
 0x1be   :  { %v234_v31 = vmul.f32 %v205_v29, %v1251_v25 }
 0x1bf   :  { %v242_v32 = vpack.c.bf16 %v236_v28, %v235_v27  ;;  %v43_v28 = vld [vmem:[%s1435_s1 + $0x38] sm:$0xff]  ;;  %s1128_s1 = smov 64  }
 0x1c0   :  { %v241_v33 = vpack.c.bf16 %v234_v31, %v233_v30 }
 0x1c2   :  { %v978_v36 = vpop.f32.mrb[4].mxu1  ;;  %982 = vmatprep.mubr.msk.bf16.mxu0 %vm81_vm1, %v241_v33 }
 0x1c3   :  { %v239_v38 = vmul.f32 %v978_v36, %v1260_v34  ;;  %v218_v39 = vpop.f32.mrb[5].mxu1  ;;  %983 = vmatmul.mubr.msk.bf16.vlgmr.msra.gmra.mrb[4].mxu0 %vm81_vm1, %v242_v32 }
 0x1c4   :  { %v237_v41 = vmul.f32 %v218_v39, %v1265_v35  ;;  %v979_v42 = vpop.f32.mrb[6].mxu1  ;;  %1004 = vmatprep.mubr.msk.bf16.mxu0 %vm1126_vm0, %v1125_v1 }
 0x1c5   :  { %v240_v43 = vmul.f32 %v979_v42, %v1271_v37  ;;  %v221_v44 = vpop.f32.mrb[7].mxu1 }
 0x1c6   :  { %v238_v45 = vmul.f32 %v221_v44, %v1278_v40 }
 0x1c7   :  { %v244_v46 = vpack.c.bf16 %v240_v43, %v239_v38 }
 0x1c8   :  { %v243_v47 = vpack.c.bf16 %v238_v45, %v237_v41 }
 0x1ca   :  { %986 = vmatprep.mubr.msk.bf16.mxu1 %vm81_vm1, %v243_v47 }
 0x1cb   :  { %987 = vmatmul.mubr.msk.bf16.vlgmr.msra.gmra.mrb[8].mxu1 %vm81_vm1, %v244_v46 }
 0x296   :  { %v984_v48 = vpop.f32.mrb[4].mxu0 }
 0x297   :  { %v330_v50 = vmul.f32 0.35355338, %v984_v48  ;;  %v297_v51 = vpop.f32.mrb[5].mxu0 }
 0x298   :  { %v328_v53 = vmul.f32 0.35355338, %v297_v51  ;;  %v985_v54 = vpop.f32.mrb[6].mxu0 }
 0x299   :  { %v331_v56 = vmul.f32 0.35355338, %v985_v54  ;;  %v300_v57 = vpop.f32.mrb[7].mxu0  ;;  %v338_v58 = vadd.f32 %v330_v50, %v38_v49 }
 0x29a   :  { %v336_v59 = vadd.f32 %v328_v53, %v36_v52  ;;  %v329_v60 = vmul.f32 0.35355338, %v300_v57 }
 0x29b   :  { %v350_v61 = vsel %vm155_vm2, %v338_v58, -inf  ;;  %v339_v62 = vadd.f32 %v331_v56, %v39_v55 }
 0x29c   :  { %351 = vmax.xlane.f32.xlu1 %v350_v61  ;;  %v344_v63 = vsel %vm155_vm2, %v336_v59, -inf  ;;  %v337_v8 = vadd.f32 %v329_v60, %v37_v0 }
 0x29d   :  { %345 = vmax.xlane.f32.xlu0 %v344_v63  ;;  %v353_v7 = vsel %vm155_vm2, %v339_v62, -inf }
 0x29e   :  { %v988_v2 = vpop.f32.mrb[8].mxu1  ;;  %v347_v13 = vsel %vm155_vm2, %v337_v8, -inf }
 0x29f   :  { %v334_v5 = vmul.f32 0.35355338, %v988_v2  ;;  %v313_v6 = vpop.f32.mrb[9].mxu1 }
 0x2a0   :  { %v989_v9 = vpop.f32.mrb[10].mxu1  ;;  %354 = vmax.xlane.f32.xlu1 %v353_v7  ;;  %v332_v12 = vmul.f32 0.35355338, %v313_v6 }
 0x2a1   :  { %v316_v11 = vpop.f32.mrb[11].mxu1  ;;  %v342_v15 = vadd.f32 %v334_v5, %v42_v10  ;;  %v335_v24 = vmul.f32 0.35355338, %v989_v9 }
 0x2a2   :  { %v333_v17 = vmul.f32 0.35355338, %v316_v11  ;;  %v340_v19 = vadd.f32 %v332_v12, %v40_v16 }
 0x2a3   :  { %v362_v18 = vsel %vm155_vm2, %v342_v15, -inf  ;;  %v343_v30 = vadd.f32 %v335_v24, %v43_v28 }
 0x2a4   :  { %348 = vmax.xlane.f32.xlu1 %v347_v13  ;;  %v356_v26 = vsel %vm155_vm2, %v340_v19, -inf  ;;  %v341_v27 = vadd.f32 %v333_v17, %v41_v21 }
 0x2a5   :  { %v365_v31 = vsel %vm155_vm2, %v343_v30, -inf }
 0x2a6   :  { %v359_v29 = vsel %vm155_vm2, %v341_v27, -inf }
 0x2a8   :  { %363 = vmax.xlane.f32.xlu1 %v362_v18 }
 0x2ac   :  { %357 = vmax.xlane.f32.xlu1 %v356_v26 }
 0x2b0   :  { %360 = vmax.xlane.f32.xlu1 %v359_v29 }
 0x2b4   :  { %366 = vmax.xlane.f32.xlu1 %v365_v31 }
 0x329   :  { %v352_v32 = vpop.xlane.xlu1 %351 }
 0x32a   :  { %v370_v33 = vsub.f32 %v338_v58, %v352_v32  ;;  %v346_v36 = vpop.xlane.xlu0 %345 }
 0x32b   :  { %v368_v38 = vsub.f32 %v336_v59, %v346_v36 }
 0x32c   :  { %v380_v39 = vmul.f32 1.442695, %v370_v33 }
 0x32d   :  { %v376_v41 = vmul.f32 1.442695, %v368_v38  ;;  %v355_v42 = vpop.xlane.xlu1 %354 }
 0x32e   :  { %1053 = vpow2.f32 %v380_v39  ;;  %v371_v43 = vsub.f32 %v339_v62, %v355_v42 }
 0x32f   :  { %1055 = vpow2.f32 %v376_v41 }
 0x330   :  { %v382_v46 = vmul.f32 1.442695, %v371_v43 }
 0x331   :  { %v349_v44 = vpop.xlane.xlu1 %348 }
 0x332   :  { %v369_v45 = vsub.f32 %v337_v8, %v349_v44 }
 0x334   :  { %v378_v47 = vmul.f32 1.442695, %v369_v45 }
 0x335   :  { %v364_v48 = vpop.xlane.xlu1 %363 }
 0x336   :  { %1057 = vpow2.f32 %v378_v47  ;;  %v374_v49 = vsub.f32 %v342_v15, %v364_v48 }
 0x337   :  { %1059 = vpow2.f32 %v382_v46 }
 0x338   :  { %v1319_v50 = vpop.eup %1053  ;;  %v388_v51 = vmul.f32 1.442695, %v374_v49 }
 0x339   :  { %v1056_v52 = vpop.eup %1055  ;;  %v358_v53 = vpop.xlane.xlu1 %357  ;;  %v398_v54 = vsel %vm155_vm2, %v1319_v50, 0.0 }
 0x33a   :  { %1061 = vpow2.f32 %v388_v51  ;;  %v372_v55 = vsub.f32 %v340_v19, %v358_v53  ;;  %399 = vadd.xlane.f32.xlu0 %v398_v54  ;;  %v392_v56 = vsel %vm155_vm2, %v1056_v52, 0.0  ;;  %v1046_v53 = vld [vmem:[%s1439_s5 + $0x8] sm:$0xff]  }
 0x33b   :  { %393 = vadd.xlane.f32.xlu1 %v392_v56 }
 0x33c   :  { %v384_v57 = vmul.f32 1.442695, %v372_v55 }
 0x33d   :  { %v361_v58 = vpop.xlane.xlu1 %360 }
 0x33e   :  { %1063 = vpow2.f32 %v384_v57  ;;  %v373_v59 = vsub.f32 %v341_v27, %v361_v58 }
 0x340   :  { %v1058_v60 = vpop.eup %1057  ;;  %v386_v61 = vmul.f32 1.442695, %v373_v59 }
 0x341   :  { %v367_v62 = vpop.xlane.xlu1 %366  ;;  %v395_v63 = vsel %vm155_vm2, %v1058_v60, 0.0  ;;  %v1060_v0 = vpop.eup %1059 }
 0x342   :  { %1065 = vpow2.f32 %v386_v61  ;;  %v375_v2 = vsub.f32 %v343_v30, %v367_v62  ;;  %396 = vadd.xlane.f32.xlu1 %v395_v63  ;;  %v401_v7 = vsel %vm155_vm2, %v1060_v0, 0.0 }
 0x344   :  { %v1062_v5 = vpop.eup %1061  ;;  %v390_v6 = vmul.f32 1.442695, %v375_v2 }
 0x345   :  { %v410_v8 = vsel %vm155_vm2, %v1062_v5, 0.0 }
 0x346   :  { %1067 = vpow2.f32 %v390_v6  ;;  %402 = vadd.xlane.f32.xlu1 %v401_v7  ;;  %411 = vadd.xlane.f32.xlu0 %v410_v8 }
 0x348   :  { %v1064_v9 = vpop.eup %1063 }
 0x349   :  { %v404_v10 = vsel %vm155_vm2, %v1064_v9, 0.0 }
 0x34a   :  { %405 = vadd.xlane.f32.xlu0 %v404_v10 }
 0x34c   :  { %v1066_v11 = vpop.eup %1065 }
 0x34d   :  { %v407_v12 = vsel %vm155_vm2, %v1066_v11, 0.0 }
 0x34e   :  { %408 = vadd.xlane.f32.xlu1 %v407_v12 }
 0x350   :  { %v1068_v13 = vpop.eup %1067 }
 0x351   :  { %v413_v15 = vsel %vm155_vm2, %v1068_v13, 0.0 }
 0x352   :  { %414 = vadd.xlane.f32.xlu1 %v413_v15 }
 0x360   :  { %436 = vrot.lane.b32.xlu0 %v1212_v14, %s1128_s1 }
 0x3c7   :  { %v400_v17 = vpop.xlane.xlu0 %399 }
 0x3c8   :  { %v394_v16 = vpop.xlane.xlu1 %393 }
 0x3c9   :  { %1069 = vrcp.f32 %v394_v16 }
 0x3cf   :  { %v397_v18 = vpop.xlane.xlu1 %396 }
 0x3d0   :  { %1071 = vrcp.f32 %v397_v18 }
 0x3d1   :  { %1073 = vrcp.f32 %v400_v17 }
 0x3d3   :  { %v412_v19 = vpop.xlane.xlu0 %411  ;;  %v403_v21 = vpop.xlane.xlu1 %402 }
 0x3d4   :  { %1075 = vrcp.f32 %v403_v21  ;;  %v1070_v26 = vpop.eup %1069 }
 0x3d5   :  { %v417_v30 = vmul.f32 %v1070_v26, %v1056_v52 }
 0x3d7   :  { %v406_v24 = vpop.xlane.xlu0 %405 }
 0x3d8   :  { %1077 = vrcp.f32 %v406_v24 }
 0x3da   :  { %v1072_v27 = vpop.eup %1071 }
 0x3db   :  { %v437_v28 = vpop.permute.xlu0 %436  ;;  %v409_v29 = vpop.xlane.xlu1 %408  ;;  %v419_v31 = vmul.f32 %v1072_v27, %v1058_v60 }
 0x3dc   :  { %1079 = vrcp.f32 %v409_v29  ;;  %990 = vmatprep.subr.bf16.mxu1 %v437_v28  ;;  %v1074_v14 = vpop.eup %1073 }
 0x3dd   :  { %991 = vmatpush3.bf16.msra.mxu1 %v437_v28  ;;  %v432_v32 = vpack.c.bf16 %v419_v31, %v417_v30  ;;  %1081 = vrcp.f32 %v412_v19  ;;  %v421_v38 = vmul.f32 %v1074_v14, %v1319_v50  ;;  %v1045_v50 = vld [vmem:[%s1439_s5] sm:$0xff]  }
 0x3de   :  { %1008 = vmatprep.subr.bf16.mxu1 %v1125_v1  ;;  %v1076_v33 = vpop.eup %1075  ;;  %1001 = vmatpush3.bf16.msra.mxu0 %v1045_v50 }
 0x3df   :  { %992 = vmatprep.mubr.msk.bf16.mxu1 %vm155_vm2, %v432_v32  ;;  %v415_v36 = vpop.xlane.xlu1 %414  ;;  %v423_v39 = vmul.f32 %v1076_v33, %v1060_v0  ;;  %1002 = vmatprep.subr.bf16.mxu0 %v1125_v1  ;;  %v1048_v32 = vld [vmem:[%s1440_s6 + $0x8] sm:$0xff]  }
 0x3e0   :  { %1083 = vrcp.f32 %v415_v36 }
 0x3e1   :  { %v433_v41 = vpack.c.bf16 %v423_v39, %v421_v38 }
 0x3e2   :  { %v1078_v42 = vpop.eup %1077  ;;  %1003 = vmatpush3.bf16.msra.mxu0 %v1046_v53 }
 0x3e3   :  { %993 = vmatmul.mubr.msk.bf16.vlgmr.msra.gmra.mrb[12].mxu1 %vm155_vm2, %v433_v41  ;;  %v425_v44 = vmul.f32 %v1078_v42, %v1064_v9  ;;  %1016 = vmatprep.subr.bf16.mxu0 %v1125_v1 }
 0x3e6   :  { %v1080_v43 = vpop.eup %1079 }
 0x3e7   :  { %v427_v45 = vmul.f32 %v1080_v43, %v1066_v11  ;;  %v1082_v46 = vpop.eup %1081 }
 0x3e8   :  { %v429_v49 = vmul.f32 %v1082_v46, %v1062_v5 }
 0x3e9   :  { %v434_v47 = vpack.c.bf16 %v427_v45, %v425_v44  ;;  %v919_v45 = vld [vmem:[%s1442_s8 + $0x2] ss:$0 sm:$0xff] }
 0x3ea   :  { %v1084_v48 = vpop.eup %1083 }
 0x3eb   :  { %996 = vmatprep.mubr.msk.bf16.mxu1 %vm155_vm2, %v434_v47  ;;  %v431_v51 = vmul.f32 %v1084_v48, %v1068_v13 }
 0x3ed   :  { %v435_v52 = vpack.c.bf16 %v431_v51, %v429_v49  ;;  %v920_v49 = vld [vmem:[%s1442_s8 + $0x3] ss:$0 sm:$0xff] }
 0x3ef   :  { %997 = vmatmul.mubr.msk.bf16.gmra.mrb[16].mxu1 %vm155_vm2, %v435_v52 }
 0x3f0   :  { %1012 = vmatprep.mubr.msk.bf16.mxu1 %vm1126_vm0, %v1125_v1 }
 0x4b6   :  { %v994_v54 = vpop.f32.mrb[12].mxu1 }
 0x4b7   :  { %v518_v55 = vmul.f32 %v994_v54, %v1236_v20  ;;  %v485_v56 = vpop.f32.mrb[13].mxu1  ;;  %v1049_v54 = vld [vmem:[%s1441_s7] sm:$0xff]  }
 0x4b8   :  { %v516_v57 = vmul.f32 %v485_v56, %v1246_v23  ;;  %v995_v58 = vpop.f32.mrb[14].mxu1  ;;  %v1051_v56 = vld [vmem:[%s1441_s7 + $0x10] sm:$0xff]  }
 0x4b9   :  { %v519_v59 = vmul.f32 %v995_v58, %v1241_v22  ;;  %v488_v60 = vpop.f32.mrb[15].mxu1  ;;  %v921_v58 = vld [vmem:[%s1442_s8 + $0x4] ss:$0 sm:$0xff] }
 0x4ba   :  { %v524_v61 = vadd.f32 %v518_v55, %v516_v57  ;;  %v517_v62 = vmul.f32 %v488_v60, %v1251_v25  ;;  %v915_v25 = vld [vmem:[%s1442_s8 + $0x1] ss:$0 sm:$0xff]  ;;  %v1050_v55 = vld [vmem:[%s1441_s7 + $0x8] sm:$0xff]   ;;  %v1052_v57 = vld [vmem:[%s1441_s7 + $0x18] sm:$0xff]  }
 0x4bc   :  { %v525_v63 = vadd.f32 %v519_v59, %v517_v62 }
 0x4c2   :  { %v998_v0 = vpop.f32.mrb[16].mxu1 }
 0x4c3   :  { %v501_v2 = vpop.f32.mrb[17].mxu1  ;;  %v522_v8 = vmul.f32 %v998_v0, %v1260_v34 }
 0x4c4   :  { %v520_v5 = vmul.f32 %v501_v2, %v1265_v35  ;;  %v999_v6 = vpop.f32.mrb[18].mxu1 }
 0x4c5   :  { %v504_v7 = vpop.f32.mrb[19].mxu1  ;;  %v523_v10 = vmul.f32 %v999_v6, %v1271_v37 }
 0x4c6   :  { %v526_v20 = vadd.f32 %v524_v61, %v520_v5  ;;  %v521_v9 = vmul.f32 %v504_v7, %v1278_v40 }
 0x4c8   :  { %v528_v23 = vadd.f32 %v526_v20, %v522_v8  ;;  %v527_v22 = vadd.f32 %v525_v63, %v521_v9 }
 0x4ca   :  { %v529_v11 = vadd.f32 %v527_v22, %v523_v10 }
 0x4cc   :  { %v530_v12 = vpack.c.bf16 %v529_v11, %v528_v23 }
 0x4ce   :  { %1005 = vmatmul.mubr.msk.bf16.vlgmr.msra.gmra.mrb[8].mxu0 %vm81_vm1, %v530_v12 }
 0x4cf   :  { %1024 = vmatprep.mubr.msk.bf16.mxu0 %vm1126_vm0, %v1125_v1  ;;  %1017 = vmatpush3.bf16.msra.mxu0 %v1049_v54  ;;  %v925_v54 = vld [vmem:[%s1442_s8 + $0x5] ss:$0 sm:$0xff] }
 0x4d0   :  { %1018 = vmatprep.subr.bf16.mxu0 %v1125_v1 }
 0x4d3   :  { %1019 = vmatpush3.bf16.msra.mxu0 %v1050_v55 }
 0x4d4   :  { %1020 = vmatprep.subr.bf16.mxu0 %v1125_v1 }
 0x4d7   :  { %1021 = vmatpush3.bf16.msra.mxu0 %v1051_v56 }
 0x4d8   :  { %1022 = vmatprep.subr.bf16.mxu0 %v1125_v1 }
 0x4db   :  { %1023 = vmatpush3.bf16.msra.mxu0 %v1052_v57 }
 0x5a1   :  { %v588_v35 = vpop.f32.mrb[8].mxu0 }
 0x5a2   :  { %v589_v34 = vadd.f32 %v915_v25, %v588_v35  ;;  %v1006_v13 = vpop.f32.mrb[9].mxu0 }
 0x5a3   :  { %v591_v15 = vpop.f32.mrb[10].mxu0 }
 0x5a4   :  { %v592_v40 = vadd.f32 %v915_v25, %v591_v15  ;;  %v1007_v16 = vpop.f32.mrb[11].mxu0  ;;  %v595_v37 = vadd.f32 %v589_v34, %v1194_v3 }
 0x5a6   :  { %v597_v17 = vsel %vm81_vm1, %v595_v37, 0.0  ;;  %v596_v18 = vadd.f32 %v592_v40, %v1199_v4  ;;  %v1047_v4 = vld [vmem:[%s1440_s6] sm:$0xff]  }
 0x5a7   :  { %598 = vadd.xlane.f32.xlu1 %v597_v17  ;;  %1009 = vmatpush3.bf16.msra.mxu1 %v1047_v4 }
 0x5a8   :  { %v600_v19 = vsel %vm81_vm1, %v596_v18, 0.0  ;;  %1010 = vmatprep.subr.bf16.mxu1 %v1125_v1 }
 0x5ab   :  { %601 = vadd.xlane.f32.xlu1 %v600_v19  ;;  %1011 = vmatpush3.bf16.msra.mxu1 %v1048_v32 }
 0x634   :  { %v599_v21 = vpop.xlane.xlu1 %598 }
 0x635   :  { %v604_v24 = vmul.f32 0.03125, %v599_v21 }
 0x637   :  { %v606_v26 = vsub.f32 %v595_v37, %v604_v24 }
 0x638   :  { %v602_v27 = vpop.xlane.xlu1 %601 }
 0x639   :  { %v605_v28 = vmul.f32 0.03125, %v602_v27  ;;  %v608_v29 = vmul.f32 %v606_v26, %v606_v26 }
 0x63b   :  { %v607_v30 = vsub.f32 %v596_v18, %v605_v28  ;;  %v610_v31 = vsel %vm81_vm1, %v608_v29, 0.0 }
 0x63c   :  { %611 = vadd.xlane.f32.xlu1 %v610_v31 }
 0x63d   :  { %v609_v14 = vmul.f32 %v607_v30, %v607_v30 }
 0x63f   :  { %v613_v3 = vsel %vm81_vm1, %v609_v14, 0.0 }
 0x640   :  { %614 = vadd.xlane.f32.xlu1 %v613_v3 }
 0x6c9   :  { %v612_v33 = vpop.xlane.xlu1 %611 }
 0x6ca   :  { %v616_v36 = vmul.f32 0.03125, %v612_v33 }
 0x6cc   :  { %v618_v38 = vadd.f32 1e-12, %v616_v36 }
 0x6cd   :  { %v615_v39 = vpop.xlane.xlu1 %614 }
 0x6ce   :  { %1085 = vrsqrt.f32 %v618_v38  ;;  %v617_v41 = vmul.f32 0.03125, %v615_v39 }
 0x6d0   :  { %v619_v42 = vadd.f32 1e-12, %v617_v41 }
 0x6d2   :  { %1087 = vrsqrt.f32 %v619_v42 }
 0x6d8   :  { %v1086_v43 = vpop.eup %1085 }
 0x6d9   :  { %v622_v44 = vmul.f32 %v1086_v43, %v606_v26 }
 0x6db   :  { %v628_v47 = vmul.f32 %v919_v45, %v622_v44 }
 0x6dc   :  { %v1088_v46 = vpop.eup %1087 }
 0x6dd   :  { %v623_v48 = vmul.f32 %v1088_v46, %v607_v30  ;;  %v1380_v52 = vadd.f32 %v920_v49, %v628_v47 }
 0x6df   :  { %v629_v51 = vmul.f32 %v919_v45, %v623_v48 }
 0x6e1   :  { %v1382_v50 = vadd.f32 %v920_v49, %v629_v51 }
 0x6e3   :  { %v636_v53 = vpack.c.bf16 %v1382_v50, %v1380_v52 }
 0x6e5   :  { %1013 = vmatmul.mubr.msk.bf16.vlgmr.msra.gmra.mrb[20].mxu1 %vm81_vm1, %v636_v53 }
 0x7b8   :  { %v694_v59 = vpop.f32.mrb[20].mxu1 }
 0x7b9   :  { %v695_v60 = vadd.f32 %v921_v58, %v694_v59  ;;  %v1014_v61 = vpop.f32.mrb[21].mxu1 }
 0x7ba   :  { %v697_v62 = vpop.f32.mrb[22].mxu1 }
 0x7bb   :  { %v703_v63 = vmul.f32 0.70710677, %v695_v60  ;;  %v698_v0 = vadd.f32 %v921_v58, %v697_v62  ;;  %v1015_v2 = vpop.f32.mrb[23].mxu1  ;;  %v701_v46 = vmul.f32 0.5, %v695_v60 }
 0x7bd   :  { %v705_v5 = vand.u32 2147483647, %v703_v63  ;;  %v704_v6 = vmul.f32 0.70710677, %v698_v0  ;;  %vm745_vm3 = vcmp.ge.f32.partialorder %v703_v63, 0.0  ;;  %v702_v47 = vmul.f32 0.5, %v698_v0 }
 0x7bf   :  { %v707_v7 = vmul.f32 0.3275911, %v705_v5  ;;  %v706_v1 = vand.u32 2147483647, %v704_v6  ;;  %v733_v23 = vsub.f32 0.0, %v705_v5  ;;  %vm746_vm4 = vcmp.ge.f32.partialorder %v704_v6, 0.0 }
 0x7c1   :  { %v709_v8 = vadd.f32 1.0, %v707_v7  ;;  %v708_v20 = vmul.f32 0.3275911, %v706_v1  ;;  %v734_v10 = vsub.f32 0.0, %v706_v1  ;;  %v735_v11 = vmul.f32 %v733_v23, %v705_v5 }
 0x7c3   :  { %1089 = vrcp.f32 %v709_v8  ;;  %v710_v9 = vadd.f32 1.0, %v708_v20  ;;  %v736_v34 = vmul.f32 %v734_v10, %v706_v1  ;;  %v737_v13 = vmul.f32 1.442695, %v735_v11 }
 0x7c5   :  { %1091 = vrcp.f32 %v710_v9  ;;  %v739_v17 = vmul.f32 1.442695, %v736_v34  ;;  %v931_v34 = vld [vmem:[%s1442_s8 + $0x6] ss:$0 sm:$0xff] }
 0x7c6   :  { %1093 = vpow2.f32 %v737_v13 }
 0x7c7   :  { %1095 = vpow2.f32 %v739_v17 }
 0x7cd   :  { %v1090_v22 = vpop.eup %1089 }
 0x7ce   :  { %v715_v12 = vmul.f32 1.0614054, %v1090_v22 }
 0x7cf   :  { %v1092_v25 = vpop.eup %1091 }
 0x7d0   :  { %v717_v35 = vadd.f32 -1.4531521, %v715_v12  ;;  %v716_v15 = vmul.f32 1.0614054, %v1092_v25  ;;  %v1094_v14 = vpop.eup %1093 }
 0x7d1   :  { %v1096_v33 = vpop.eup %1095 }
 0x7d2   :  { %v719_v40 = vmul.f32 %v1090_v22, %v717_v35  ;;  %v718_v16 = vadd.f32 -1.4531521, %v716_v15  ;;  %v932_v15 = vld [vmem:[%s1442_s8 + $0x7] ss:$0 sm:$0xff] }
 0x7d4   :  { %v721_v37 = vadd.f32 1.4214138, %v719_v40  ;;  %v720_v18 = vmul.f32 %v1092_v25, %v718_v16 }
 0x7d6   :  { %v723_v19 = vmul.f32 %v1090_v22, %v721_v37  ;;  %v722_v21 = vadd.f32 1.4214138, %v720_v18 }
 0x7d8   :  { %v725_v24 = vadd.f32 -0.28449672, %v723_v19  ;;  %v724_v26 = vmul.f32 %v1092_v25, %v722_v21 }
 0x7da   :  { %v727_v27 = vmul.f32 %v1090_v22, %v725_v24  ;;  %v726_v28 = vadd.f32 -0.28449672, %v724_v26 }
 0x7dc   :  { %v729_v29 = vadd.f32 0.2548296, %v727_v27  ;;  %v728_v30 = vmul.f32 %v1092_v25, %v726_v28 }
 0x7de   :  { %v731_v31 = vmul.f32 %v1090_v22, %v729_v29  ;;  %v730_v3 = vadd.f32 0.2548296, %v728_v30 }
 0x7e0   :  { %v741_v4 = vmul.f32 %v1094_v14, %v731_v31  ;;  %v732_v32 = vmul.f32 %v1092_v25, %v730_v3 }
 0x7e2   :  { %v743_v36 = vsub.f32 1.0, %v741_v4  ;;  %v742_v38 = vmul.f32 %v1096_v33, %v732_v32 }
 0x7e4   :  { %v747_v39 = vsub.f32 0.0, %v743_v36  ;;  %v744_v41 = vsub.f32 1.0, %v742_v38 }
 0x7e6   :  { %v749_v42 = vsel %vm745_vm3, %v743_v36, %v747_v39  ;;  %v748_v43 = vsub.f32 0.0, %v744_v41 }
 0x7e7   :  { %v751_v44 = vadd.f32 1.0, %v749_v42 }
 0x7e8   :  { %v750_v45 = vsel %vm746_vm4, %v744_v41, %v748_v43 }
 0x7e9   :  { %v752_v48 = vadd.f32 1.0, %v750_v45  ;;  %v753_v49 = vmul.f32 %v751_v44, %v701_v46 }
 0x7eb   :  { %v754_v51 = vmul.f32 %v752_v48, %v702_v47 }
 0x7ed   :  { %v755_v53 = vpack.c.bf16 %v754_v51, %v753_v49 }
 0x7ef   :  { %1025 = vmatmul.mubr.msk.bf16.vlgmr.msra.gmra.mrb[12].mxu0 %vm792_vm5, %v755_v53 }
 0x8c2   :  { %v830_v55 = vpop.f32.mrb[12].mxu0 }
 0x8c3   :  { %v831_v56 = vadd.f32 %v925_v54, %v830_v55  ;;  %v1026_v57 = vpop.f32.mrb[13].mxu0 }
 0x8c4   :  { %v833_v58 = vpop.f32.mrb[14].mxu0 }
 0x8c5   :  { %v834_v59 = vadd.f32 %v925_v54, %v833_v58  ;;  %v1027_v61 = vpop.f32.mrb[15].mxu0  ;;  %v837_v62 = vadd.f32 %v831_v56, %v1380_v52 }
 0x8c7   :  { %v839_v60 = vsel %vm81_vm1, %v837_v62, 0.0  ;;  %v838_v63 = vadd.f32 %v834_v59, %v1382_v50 }
 0x8c8   :  { %840 = vadd.xlane.f32.xlu1 %v839_v60 }
 0x8c9   :  { %v842_v0 = vsel %vm81_vm1, %v838_v63, 0.0 }
 0x8cc   :  { %843 = vadd.xlane.f32.xlu1 %v842_v0 }
 0x955   :  { %v841_v2 = vpop.xlane.xlu1 %840 }
 0x956   :  { %v845_v5 = vmul.f32 0.03125, %v841_v2 }
 0x958   :  { %v847_v6 = vsub.f32 %v837_v62, %v845_v5 }
 0x959   :  { %v844_v7 = vpop.xlane.xlu1 %843 }
 0x95a   :  { %v846_v1 = vmul.f32 0.03125, %v844_v7  ;;  %v849_v8 = vmul.f32 %v847_v6, %v847_v6 }
 0x95c   :  { %v848_v20 = vsub.f32 %v838_v63, %v846_v1  ;;  %v851_v9 = vsel %vm81_vm1, %v849_v8, 0.0 }
 0x95d   :  { %852 = vadd.xlane.f32.xlu0 %v851_v9 }
 0x95e   :  { %v850_v23 = vmul.f32 %v848_v20, %v848_v20 }
 0x960   :  { %v854_v52 = vsel %vm81_vm1, %v850_v23, 0.0 }
 0x961   :  { %855 = vadd.xlane.f32.xlu1 %v854_v52 }
 0x9ea   :  { %v853_v10 = vpop.xlane.xlu0 %852 }
 0x9eb   :  { %v857_v50 = vmul.f32 0.03125, %v853_v10 }
 0x9ed   :  { %v859_v22 = vadd.f32 1e-12, %v857_v50 }
 0x9ee   :  { %v856_v11 = vpop.xlane.xlu1 %855 }
 0x9ef   :  { %1097 = vrsqrt.f32 %v859_v22  ;;  %v858_v12 = vmul.f32 0.03125, %v856_v11 }
 0x9f1   :  { %v860_v25 = vadd.f32 1e-12, %v858_v12 }
 0x9f3   :  { %1099 = vrsqrt.f32 %v860_v25 }
 0x9f9   :  { %v1098_v35 = vpop.eup %1097 }
 0x9fa   :  { %v863_v13 = vmul.f32 %v1098_v35, %v847_v6 }
 0x9fc   :  { %v869_v40 = vmul.f32 %v931_v34, %v863_v13 }
 0x9fd   :  { %v1100_v16 = vpop.eup %1099 }
 0x9fe   :  { %v864_v37 = vmul.f32 %v1100_v16, %v848_v20  ;;  %v875_v17 = vadd.f32 %v932_v15, %v869_v40 }
 0xa00   :  { %v870_v18 = vmul.f32 %v931_v34, %v864_v37  ;;  %877 = vst.msk [vmem:[#allocation2] sm:$0xff] %vm81_vm1, %v875_v17 }
 0xa02   :  { %v876_v19 = vadd.f32 %v932_v15, %v870_v18 }
 0xa04   :  { %878 = vst.msk [vmem:[#allocation2 + $0x8] sm:$0xff] %vm81_vm1, %v876_v19 }
 0xa05   :  { %1112 = shalt.err (!%p1109_p4)
}
 0xa06   :  { %s1113_s15 = scalar_lea.hbm %s1443_s9, 256 }
 0xa07   :  { %p1114_p5 = scmp.ne.s32.totalorder %s1443_s9, %s1113_s15  ;;  %p1117_p6 = scmp.lt.u32.totalorder %s1113_s15, %s1443_s9 }
 0xa09   :  { %p1119_p7 = pnand %p1117_p6, %p1114_p5 }
 0xa0b   :  { %1122 = shalt.err (!%p1119_p7)
}
 0xa0c   :  { %s1130_s3 = smov 128   ;;  %s1131_s0 = smov 8  }
 0xa0d   :  { %890 = dma.vmem_to_hbm [thread:$0]  %s885_s13, 256, %s1443_s9, [#allocation3], %s1130_s3, %s1130_s3, %s1131_s0  }
 0xa0e   :  { %1123 = dma.done.wait [#allocation3], 256  }
 0xa0f   :  { %1124 = vsyncadd [#allocation3], 4294967040 }
 0xa10   :  { %894 = vsyncpa [#allocation3], 1 }

</bundles_post_ra>
